<compile_context>
chip_gen: v7x
topology: tpu7x:2x2x1
jax: 0.10.0
libtpu: 0.0.40
codegen_flags: <defaults>
</compile_context>

<pallas_src>
import jax
import jax.numpy as jnp
from jax.experimental import pallas as pl
from jax.experimental.pallas import tpu as pltpu


# Below this many bytes the copy is pure launch overhead -> metadata reshape.
_FAST_PATH_BYTES = 32 * 1024
# Target per-DMA chunk size; several chunks in flight use multiple DMA engines.
_CHUNK_BYTES = 8 * 1024 * 1024
_MAX_CHUNKS = 8


def _make_dma_copy_kernel(chunks):
    """Build a kernel that copies static row-chunks HBM->HBM via async DMA.

    `chunks` is a tuple of (row_start, row_count) Python ints; all DMAs are
    started first (in flight concurrently), then waited on.
    """

    def kernel(x_hbm, o_hbm, sem):
        copies = []
        for i, (start, size) in enumerate(chunks):
            cp = pltpu.make_async_copy(
                x_hbm.at[pl.ds(start, size), :],
                o_hbm.at[pl.ds(start, size), :],
                sem.at[i],
            )
            cp.start()
            copies.append(cp)
        for cp in copies:
            cp.wait()

    return kernel


def _lane_dense_2d(n):
    """Pick (rows, cols) for a flat length-n buffer.

    The DMA path is layout-agnostic, so the fallback (1, n) is only a
    "single chunk" case, not a perf/VMEM cliff.
    """
    for cols in (512, 256, 128):
        if n % cols == 0:
            return n // cols, cols
    return 1, n


def _chunk_rows(rows, cols, itemsize, chunk_bytes):
    """Split `rows` into up to _MAX_CHUNKS roughly-equal static chunks."""
    total = rows * cols * itemsize
    n_chunks = max(1, min(_MAX_CHUNKS, pl.cdiv(total, chunk_bytes), rows))
    base = rows // n_chunks
    rem = rows % n_chunks
    chunks = []
    start = 0
    for i in range(n_chunks):
        size = base + (1 if i < rem else 0)
        if size == 0:
            continue
        chunks.append((start, size))
        start += size
    return tuple(chunks)


def _pallas_copy(x2, chunk_bytes=_CHUNK_BYTES):
    """Whole-array HBM->HBM copy via in-kernel async DMA (no VMEM staging)."""
    rows, cols = x2.shape
    itemsize = x2.dtype.itemsize
    chunks = _chunk_rows(rows, cols, itemsize, chunk_bytes)

    return pl.pallas_call(
        _make_dma_copy_kernel(chunks),
        out_shape=jax.ShapeDtypeStruct((rows, cols), x2.dtype),
        in_specs=[pl.BlockSpec(memory_space=pl.ANY)],
        out_specs=pl.BlockSpec(memory_space=pl.ANY),
        scratch_shapes=[pltpu.SemaphoreType.DMA((len(chunks),))],
        cost_estimate=pl.CostEstimate(
            flops=0,
            transcendentals=0,
            bytes_accessed=2 * rows * cols * itemsize,
        ),
    )(x2)


def squeeze_pallas(x, dim):
    """Equivalent of torch.squeeze(x, dim=dim); data path is a Pallas DMA."""
    ndim = x.ndim
    if ndim == 0:
        return x
    d = dim % ndim
    if x.shape[d] == 1:
        out_shape = tuple(s for i, s in enumerate(x.shape) if i != d)
    else:
        out_shape = tuple(x.shape)

    n = int(x.size)
    nbytes = n * x.dtype.itemsize
    if n == 0 or nbytes <= _FAST_PATH_BYTES:
        # Tiny/empty tensor: squeeze is metadata only; skip the kernel.
        return jnp.reshape(x, out_shape)

    rows, cols = _lane_dense_2d(n)
    y2 = _pallas_copy(jnp.reshape(x, (rows, cols)))
    return jnp.reshape(y2, out_shape)


if __name__ == "__main__":
    key = jax.random.PRNGKey(0)
    k1, k2, k3 = jax.random.split(key, 3)

    # Main case: large enough (256 KiB) to take the Pallas HBM->HBM DMA path.
    x = jax.random.normal(k1, (2, 1, 64, 512), dtype=jnp.float32)
    dim = 1
    ref = jnp.squeeze(x, axis=dim)
    y = jax.block_until_ready(squeeze_pallas(x, dim))
    assert y.shape == ref.shape, (y.shape, ref.shape)
    assert y.dtype == ref.dtype
    assert jnp.array_equal(y, ref)

    # Small input (2x1x16x16, matching the module's typical use) -> fast path.
    xs = jax.random.normal(k2, (2, 1, 16, 16), dtype=jnp.float32)
    ys = jax.block_until_ready(squeeze_pallas(xs, 1))
    assert ys.shape == (2, 16, 16)
    assert jnp.array_equal(ys, jnp.squeeze(xs, axis=1))

    # torch.squeeze no-op semantics: size(dim) != 1 -> shape unchanged.
    xn = jax.random.normal(k3, (2, 4, 16, 16), dtype=jnp.float32)
    yn = jax.block_until_ready(squeeze_pallas(xn, 1))
    assert yn.shape == xn.shape
    assert jnp.array_equal(yn, xn)

    # Negative-dim handling (dim=-3 addresses the size-1 axis of x).
    y_neg = jax.block_until_ready(squeeze_pallas(x, -3))
    assert y_neg.shape == ref.shape
    assert jnp.array_equal(y_neg, ref)

    # Awkward (odd) flat length exercises the (1, n) single-DMA fallback.
    xo = jax.random.normal(key, (1, 3, 251, 127), dtype=jnp.float32)
    yo = jax.block_until_ready(squeeze_pallas(xo, 0))
    assert yo.shape == (3, 251, 127)
    assert jnp.array_equal(yo, jnp.squeeze(xo, axis=0))

    # Exercise the multiple-DMAs-in-flight path with a small chunk size.
    x2 = jnp.reshape(x, (128, 512))
    y2 = jax.block_until_ready(_pallas_copy(x2, chunk_bytes=64 * 1024))
    assert jnp.array_equal(y2, x2)

    print("KERNEL_OK")
</pallas_src>

<mosaic_0001>
module attributes {stable_mosaic.version = 11 : i64} {
  func.func @kernel(%arg0: memref<128x512xf32, #tpu.memory_space<any>>, %arg1: memref<128x512xf32, #tpu.memory_space<any>>, %arg2: memref<1x!tpu.dma_semaphore, #tpu.memory_space<semaphore_mem>>) attributes {dimension_semantics = [], scalar_prefetch = 0 : i64, scratch_operands = 1 : i64, tpu.core_type = #tpu.core_type<tc>} {
    %c0_i32 = arith.constant 0 : i32
    %c0_i32_0 = arith.constant 0 : i32
    %c0_i32_1 = arith.constant 0 : i32
    %0 = tpu.memref_slice %arg0[%c0_i32_0, %c0_i32_1] : memref<128x512xf32, #tpu.memory_space<any>> -> memref<128x512xf32, #tpu.memory_space<any>>
    %c0_i32_2 = arith.constant 0 : i32
    %c0_i32_3 = arith.constant 0 : i32
    %1 = tpu.memref_slice %arg1[%c0_i32_2, %c0_i32_3] : memref<128x512xf32, #tpu.memory_space<any>> -> memref<128x512xf32, #tpu.memory_space<any>>
    %2 = tpu.memref_slice %arg2[%c0_i32] : memref<1x!tpu.dma_semaphore, #tpu.memory_space<semaphore_mem>> -> memref<1x!tpu.dma_semaphore, #tpu.memory_space<semaphore_mem>>
    %3 = tpu.memref_squeeze %2 : memref<1x!tpu.dma_semaphore, #tpu.memory_space<semaphore_mem>> -> memref<!tpu.dma_semaphore, #tpu.memory_space<semaphore_mem>>
    tpu.enqueue_dma source(%0 : memref<128x512xf32, #tpu.memory_space<any>>) target(%1 : memref<128x512xf32, #tpu.memory_space<any>>) target_semaphore(%3 : memref<!tpu.dma_semaphore, #tpu.memory_space<semaphore_mem>>)
    %c0_i32_4 = arith.constant 0 : i32
    %c0_i32_5 = arith.constant 0 : i32
    %c0_i32_6 = arith.constant 0 : i32
    %4 = tpu.memref_slice %arg0[%c0_i32_5, %c0_i32_6] : memref<128x512xf32, #tpu.memory_space<any>> -> memref<128x512xf32, #tpu.memory_space<any>>
    %c0_i32_7 = arith.constant 0 : i32
    %c0_i32_8 = arith.constant 0 : i32
    %5 = tpu.memref_slice %arg1[%c0_i32_7, %c0_i32_8] : memref<128x512xf32, #tpu.memory_space<any>> -> memref<128x512xf32, #tpu.memory_space<any>>
    %6 = tpu.memref_slice %arg2[%c0_i32_4] : memref<1x!tpu.dma_semaphore, #tpu.memory_space<semaphore_mem>> -> memref<1x!tpu.dma_semaphore, #tpu.memory_space<semaphore_mem>>
    %7 = tpu.memref_squeeze %6 : memref<1x!tpu.dma_semaphore, #tpu.memory_space<semaphore_mem>> -> memref<!tpu.dma_semaphore, #tpu.memory_space<semaphore_mem>>
    tpu.wait_dma2 semaphore(%7 : memref<!tpu.dma_semaphore, #tpu.memory_space<semaphore_mem>>) src(%4 : memref<128x512xf32, #tpu.memory_space<any>>) dst(%5 : memref<128x512xf32, #tpu.memory_space<any>>)
    return
  }
}

</mosaic_0001>

<bundles_post_ra>
// kernel: tpu_custom_call.1
= control target key start
LH: loop header
LB: loop body
LE: loop exit
PB: predicated region body
PF: predicated region fallthrough
CT: control target
= control target key end

     0   :  { %s35_s6 = smov [#allocation2]   ;;  %s36_s7 = smov [#allocation3]   ;;  %s54_s0 = inlined_call_operand.hbm [shape: f32[128,512], index: 0, kind: input, shape index: {}]   ;;  %s55_s1 = inlined_call_operand.hbm [shape: f32[128,512], index: 1, kind: output, shape index: {}]  }
   0x1   :  { %s37_s8 = smov 0  }
   0x2   :  { %18 = dma.general %s54_s0, 8192, %s55_s1, %s35_s6, %s36_s7, [#allocation4], %s37_s8, 0  }
   0x3   :  { %33 = dma.done.wait [#allocation2], 8192 }
   0x4   :  { %34 = vsyncadd [#allocation2], 4294959104 }
   0x5   :  { %23 = vsyncmov [#allocation2] }
   0x8   :  { %s24_s13 = vpop.sfrf %23 }
   0x9   :  { %p29_p0 = scmp.ne.s32.totalorder %s24_s13, 0 }
   0xb   :  { %28 = shalt.err (%p29_p0)  }

</bundles_post_ra>
